<compile_context>
chip_gen: v7x
topology: tpu7x:2x2x1
jax: 0.10.0
libtpu: 0.0.40
codegen_flags: <defaults>
</compile_context>

<pallas_src>
import functools

import jax
import jax.numpy as jnp
from jax.experimental import pallas as pl
from jax.experimental.pallas import tpu as pltpu

LANE = 128      # lane width of a vreg
SUBLANE = 8     # sublane count of a vreg (f32)


def _round_up(x: int, m: int) -> int:
    return ((x + m - 1) // m) * m


# ----------------------------- Pallas kernel --------------------------------

def _fused_mlp_kernel(x_ref, p_ref, o_ref, *, layer_meta):
    """Fully fused MLP.

    x_ref : (B, input_dim)              VMEM
    p_ref : (total_rows, max_out_pad)   VMEM, packed params:
              layer_meta[i] = (w_row, k, b_row, n)  -- all static Python ints
              weight_i = p_ref[w_row : w_row+k, 0:n]  (pre-transposed, padded)
              bias_i   = p_ref[b_row : b_row+1, 0:n]
    o_ref : (B, n_last)                 VMEM (lane-padded final width)

    Intermediate activations never leave the kernel (no HBM round trips).
    """
    num_layers = len(layer_meta)
    h = x_ref[...]
    for i, (w_row, k, b_row, n) in enumerate(layer_meta):
        w = p_ref[pl.ds(w_row, k), pl.ds(0, n)]
        b = p_ref[pl.ds(b_row, 1), pl.ds(0, n)]
        h = jnp.dot(h, w, preferred_element_type=jnp.float32) + b
        if i < num_layers - 1:
            h = jnp.maximum(h, 0.0)          # ReLU between layers only
    o_ref[...] = h.astype(o_ref.dtype)


def mlp_forward(x, packed, layer_meta):
    """Run the whole MLP in ONE grid-less pallas_call.

    Returns the lane-padded output (B, n_pad_last); columns beyond the true
    output_dim are exact zeros, so consumers can slice lazily (kept off the
    hot path per the perf review).
    """
    B = x.shape[0]
    n_out = layer_meta[-1][3]
    kernel = functools.partial(_fused_mlp_kernel, layer_meta=layer_meta)
    return pl.pallas_call(
        kernel,
        out_shape=jax.ShapeDtypeStruct((B, n_out), x.dtype),
        in_specs=[pl.BlockSpec(memory_space=pltpu.MemorySpace.VMEM),
                  pl.BlockSpec(memory_space=pltpu.MemorySpace.VMEM)],
        out_specs=pl.BlockSpec(memory_space=pltpu.MemorySpace.VMEM),
    )(x, packed)


# ------------------------------ Params ---------------------------------------

def init_mlp_params(key, input_dim, hidden_dims, output_dim):
    """Xavier-uniform weights (PyTorch layout (out, in)), bias = 0.01.
    Mirrors MLP.init_xavier_uniform."""
    dims = [input_dim] + list(hidden_dims) + [output_dim]
    params = []
    for i in range(len(dims) - 1):
        in_dim, out_dim = dims[i], dims[i + 1]
        key, wkey = jax.random.split(key)
        bound = (6.0 / (in_dim + out_dim)) ** 0.5
        w = jax.random.uniform(wkey, (out_dim, in_dim),
                               minval=-bound, maxval=bound,
                               dtype=jnp.float32)
        b = jnp.full((out_dim,), 0.01, dtype=jnp.float32)
        params.append((w, b))
    return params


def prepare_params(params, input_dim):
    """One-time layout prep (paid at init, not per forward).

    Packs every layer's transposed, zero-padded weight and its bias into a
    single 2-D f32 buffer:

      rows [w_row, w_row + k)   : W_i^T in the top-left (in_i, out_i) corner,
                                  remaining rows/cols zero.  k is the kernel's
                                  contraction width for layer i (input_dim for
                                  layer 0, previous layer's padded out width
                                  otherwise), stored rounded up to 8 rows.
      rows [b_row, b_row + 8)   : bias_i in row b_row, cols [0, out_i), rest 0.

    Every layer's out width is padded to a multiple of 128 lanes; padded
    weight columns / bias lanes / in-rows are zero so results stay exact.

    Returns (packed, layer_meta) with layer_meta[i] = (w_row, k, b_row, n_pad).
    """
    max_n = max(_round_up(w.shape[0], LANE) for w, _ in params)
    blocks, meta = [], []
    row = 0
    prev_n_pad = None
    for i, (w, b) in enumerate(params):
        out_dim, in_dim = w.shape
        n_pad = _round_up(out_dim, LANE)
        k = input_dim if i == 0 else prev_n_pad          # kernel K width
        k_store = _round_up(k, SUBLANE)
        w_blk = jnp.zeros((k_store, max_n), jnp.float32)
        w_blk = w_blk.at[:in_dim, :out_dim].set(jnp.asarray(w, jnp.float32).T)
        b_blk = jnp.zeros((SUBLANE, max_n), jnp.float32)
        b_blk = b_blk.at[0, :out_dim].set(jnp.asarray(b, jnp.float32))
        blocks += [w_blk, b_blk]
        meta.append((row, k, row + k_store, n_pad))
        row += k_store + SUBLANE
        prev_n_pad = n_pad
    packed = jnp.concatenate(blocks, axis=0)
    return packed, tuple(meta)


def mlp_reference(x, params):
    """Plain-JAX reference matching the PyTorch forward."""
    n = len(params)
    h = x
    for i, (w, b) in enumerate(params):
        h = h @ w.T + b
        if i < n - 1:
            h = jnp.maximum(h, 0.0)
    return h


# --------------------------------- main --------------------------------------

if __name__ == "__main__":
    key = jax.random.PRNGKey(0)
    key, xkey = jax.random.split(key)

    batch = 8
    input_dim = 32
    hidden_dims = [64, 64]
    output_dim = 16

    x = jax.random.normal(xkey, (batch, input_dim), dtype=jnp.float32)
    params = init_mlp_params(key, input_dim, hidden_dims, output_dim)
    packed, meta = prepare_params(params, input_dim)   # pack + pad ONCE

    out_padded = mlp_forward(x, packed, meta)
    out_padded = jax.block_until_ready(out_padded)

    # Cold-path slice only for verification; hot path keeps the padded slab.
    out = out_padded[:, :output_dim]
    ref = mlp_reference(x, params)

    assert out.shape == (batch, output_dim)
    # f32 matmuls may be lowered via bf16 passes at default precision on TPU,
    # so allow a small tolerance vs the XLA reference.
    assert jnp.allclose(out, ref, atol=2e-3, rtol=2e-3), "mismatch vs reference"
    # Padded lanes are exact zeros (zero weight columns + zero bias).
    assert bool(jnp.all(out_padded[:, output_dim:] == 0.0))

    print("KERNEL_OK")
</pallas_src>

<mosaic_0001>
module attributes {stable_mosaic.version = 11 : i64} {
  func.func @_fused_mlp_kernel(%arg0: memref<8x32xf32, #tpu.memory_space<vmem>>, %arg1: memref<312x128xf32, #tpu.memory_space<vmem>>, %arg2: memref<8x128xf32, #tpu.memory_space<vmem>>) attributes {dimension_semantics = [], scalar_prefetch = 0 : i64, scratch_operands = 0 : i64, tpu.core_type = #tpu.core_type<tc>} {
    %c0 = arith.constant 0 : index
    %c0_0 = arith.constant 0 : index
    %0 = vector.load %arg0[%c0, %c0_0] : memref<8x32xf32, #tpu.memory_space<vmem>>, vector<8x32xf32>
    %c0_1 = arith.constant 0 : index
    %c0_2 = arith.constant 0 : index
    %1 = vector.load %arg1[%c0_1, %c0_2] : memref<312x128xf32, #tpu.memory_space<vmem>>, vector<32x128xf32>
    %c32 = arith.constant 32 : index
    %c0_3 = arith.constant 0 : index
    %2 = vector.load %arg1[%c32, %c0_3] : memref<312x128xf32, #tpu.memory_space<vmem>>, vector<1x128xf32>
    %cst = arith.constant dense<0.000000e+00> : vector<8x128xf32>
    %3 = tpu.matmul %0, %1, %cst {dimension_numbers = #tpu.dot_dimension_numbers<[1], [0], [0], [1], [0, 0, 1, 1], [], []>} : vector<8x32xf32>, vector<32x128xf32>, vector<8x128xf32> -> vector<8x128xf32>
    %4 = vector.broadcast %2 : vector<1x128xf32> to vector<8x128xf32>
    %5 = arith.addf %3, %4 : vector<8x128xf32>
    %cst_4 = arith.constant 0.000000e+00 : f32
    %6 = vector.broadcast %cst_4 : f32 to vector<8x128xf32>
    %7 = arith.maximumf %5, %6 : vector<8x128xf32>
    %c40 = arith.constant 40 : index
    %c0_5 = arith.constant 0 : index
    %8 = vector.load %arg1[%c40, %c0_5] : memref<312x128xf32, #tpu.memory_space<vmem>>, vector<128x128xf32>
    %c168 = arith.constant 168 : index
    %c0_6 = arith.constant 0 : index
    %9 = vector.load %arg1[%c168, %c0_6] : memref<312x128xf32, #tpu.memory_space<vmem>>, vector<1x128xf32>
    %cst_7 = arith.constant dense<0.000000e+00> : vector<8x128xf32>
    %10 = tpu.matmul %7, %8, %cst_7 {dimension_numbers = #tpu.dot_dimension_numbers<[1], [0], [0], [1], [0, 0, 1, 1], [], []>} : vector<8x128xf32>, vector<128x128xf32>, vector<8x128xf32> -> vector<8x128xf32>
    %11 = vector.broadcast %9 : vector<1x128xf32> to vector<8x128xf32>
    %12 = arith.addf %10, %11 : vector<8x128xf32>
    %cst_8 = arith.constant 0.000000e+00 : f32
    %13 = vector.broadcast %cst_8 : f32 to vector<8x128xf32>
    %14 = arith.maximumf %12, %13 : vector<8x128xf32>
    %c176 = arith.constant 176 : index
    %c0_9 = arith.constant 0 : index
    %15 = vector.load %arg1[%c176, %c0_9] : memref<312x128xf32, #tpu.memory_space<vmem>>, vector<128x128xf32>
    %c304 = arith.constant 304 : index
    %c0_10 = arith.constant 0 : index
    %16 = vector.load %arg1[%c304, %c0_10] : memref<312x128xf32, #tpu.memory_space<vmem>>, vector<1x128xf32>
    %cst_11 = arith.constant dense<0.000000e+00> : vector<8x128xf32>
    %17 = tpu.matmul %14, %15, %cst_11 {dimension_numbers = #tpu.dot_dimension_numbers<[1], [0], [0], [1], [0, 0, 1, 1], [], []>} : vector<8x128xf32>, vector<128x128xf32>, vector<8x128xf32> -> vector<8x128xf32>
    %18 = vector.broadcast %16 : vector<1x128xf32> to vector<8x128xf32>
    %19 = arith.addf %17, %18 : vector<8x128xf32>
    %c0_12 = arith.constant 0 : index
    %c0_13 = arith.constant 0 : index
    %20 = vector.load %arg2[%c0_12, %c0_13] : memref<8x128xf32, #tpu.memory_space<vmem>>, vector<8x128xf32>
    tpu.vector_store %arg2[%c0_12, %c0_13], %19 {strides = array<i32>} : memref<8x128xf32, #tpu.memory_space<vmem>>, vector<8x128xf32>,
    return
  }
}

</mosaic_0001>

<bundles_post_ra>
// kernel: tpu_custom_call.1
= control target key start
LH: loop header
LB: loop body
LE: loop exit
PB: predicated region body
PF: predicated region fallthrough
CT: control target
= control target key end

     0   :  { %7 = vsyncpa [#allocation3], 0  ;;  %s668_s0 = inlined_call_operand.hbm [shape: f32[8,32], index: 0, kind: input, shape index: {}]   ;;  %s669_s1 = inlined_call_operand.hbm [shape: f32[312,128], index: 1, kind: input, shape index: {}]   ;;  %s670_s2 = inlined_call_operand.hbm [shape: f32[8,128], index: 2, kind: output, shape index: {}]  }
   0x1   :  { %8 = vsyncpa [#allocation6], 0 }
   0x2   :  { %9 = vsyncpa [#allocation4], 0  ;;  %s581_s9 = smov [#allocation2]   ;;  %s582_s11 = smov [#allocation5]  }
   0x3   :  { %s16_s10 = sshll.u32 %s581_s9, 4  ;;  %s25_s12 = sshll.u32 %s582_s11, 4  ;;  %s17_s10 = int_to_ptr.vmem [resolvable:$true] %s16_s10  ;;  %s604_s12 = int_to_ptr.vmem [resolvable:$true] %s25_s12 }
   0x4   :  { %s509_s15 = scalar_lea.hbm %s668_s0, 128 }
   0x5   :  { %p510_p0 = scmp.ne.s32.totalorder %s668_s0, %s509_s15  ;;  %p513_p1 = scmp.lt.u32.totalorder %s509_s15, %s668_s0 }
   0x7   :  { %p515_p2 = pnand %p513_p1, %p510_p0 }
   0x9   :  { %518 = shalt.err (!%p515_p2)
}
   0xa   :  { %s519_s20 = scalar_lea.vmem %s17_s10, 128  ;;  %p524_p4 = scmp.lt.s32.totalorder %s17_s10, %s17_s10 }
   0xb   :  { %p520_p3 = scmp.ne.s32.totalorder %s17_s10, %s519_s20  ;;  %p525_p5 = scmp.lt.s32.totalorder %s519_s20, %s519_s20 }
   0xd   :  { %p526_p6 = por %p525_p5, %p524_p4 }
   0xf   :  { %p527_p7 = pnand %p526_p6, %p520_p3 }
  0x11   :  { %530 = shalt.err (!%p527_p7)
}
  0x12   :  { %19 = dma.hbm_to_vmem [thread:$0]  %s668_s0, 128, %s17_s10, [#allocation3]  }
  0x13   :  { %s531_s25 = scalar_lea.hbm %s669_s1, 4992 }
  0x14   :  { %p532_p8 = scmp.ne.s32.totalorder %s669_s1, %s531_s25  ;;  %p535_p9 = scmp.lt.u32.totalorder %s531_s25, %s669_s1 }
  0x16   :  { %p537_p10 = pnand %p535_p9, %p532_p8 }
  0x18   :  { %540 = shalt.err (!%p537_p10)
}
  0x19   :  { %s541_s30 = scalar_lea.vmem %s604_s12, 4992  ;;  %p546_p12 = scmp.lt.s32.totalorder %s604_s12, %s604_s12 }
  0x1a   :  { %p542_p11 = scmp.ne.s32.totalorder %s604_s12, %s541_s30  ;;  %p547_p13 = scmp.lt.s32.totalorder %s541_s30, %s541_s30 }
  0x1c   :  { %p548_p0 = por %p547_p13, %p546_p12 }
  0x1e   :  { %p549_p1 = pnand %p548_p0, %p542_p11 }
  0x20   :  { %552 = shalt.err (!%p549_p1)
}
  0x21   :  { %s583_s0 = smov 128   ;;  %s584_s3 = smov 8  }
  0x22   :  { %31 = dma.hbm_to_vmem [thread:$0]  %s669_s1, 4992, %s604_s12, [#allocation6], %s583_s0, %s583_s0, %s584_s3  }
  0x23   :  { %575 = dma.done.wait [#allocation3], 128  }
  0x24   :  { %576 = vsyncadd [#allocation3], 4294967168 }
  0x25   :  { %577 = dma.done.wait [#allocation6], 4992  }
  0x26   :  { %578 = vsyncadd [#allocation6], 4294962304  ;;  %v585_v0 = vmov 0.0|0.0   ;;  %vm586_vm0 = vmmov 0   ;;  %v587_v1 = vmov 0.0   ;;  %v39_v2 = vld [vmem:[#allocation5] sm:$0xff] }
  0x27   :  { %447 = vmatprep.subr.bf16.mxu0 %v585_v0  ;;  %374 = vmatprep.mubr.msk.f32.mxu0 %vm586_vm0, %v587_v1  ;;  %v40_v3 = vld [vmem:[#allocation5 + $0x8] sm:$0xff]  ;;  %v41_v4 = vld [vmem:[#allocation5 + $0x10] sm:$0xff]  ;;  %v42_v6 = vld [vmem:[#allocation5 + $0x18] sm:$0xff]  ;;  %vm48_vm1 = vcmask 261120   ;;  %s588_s1 = smov [#allocation7]  }
  0x28   :  { %453 = vmatprep.subr.bf16.mxu1 %v585_v0  ;;  %409 = vmatprep.mubr.msk.f32.mxu1 %vm586_vm0, %v587_v1  ;;  %v448_v5 = vpack.c.bf16 %v40_v3, %v39_v2  ;;  %v123_v7 = vld [vmem:[#allocation5 + $0x28] sm:$0xff]  ;;  %v124_v8 = vld [vmem:[#allocation5 + $0x30] sm:$0xff]  ;;  %v125_v9 = vld [vmem:[#allocation5 + $0x38] sm:$0xff]  ;;  %v451_v11 = vpack.c.bf16 %v42_v6, %v41_v4  ;;  %s313_s6 = sshll.u32 %s588_s1, 4  ;;  %s314_s6 = int_to_ptr.vmem [resolvable:$true] %s313_s6 }
  0x29   :  { %v126_v10 = vld [vmem:[#allocation5 + $0x40] sm:$0xff]  ;;  %v454_v12 = vpack.c.bf16 %v124_v8, %v123_v7  ;;  %v127_v14 = vld [vmem:[#allocation5 + $0x48] sm:$0xff]  ;;  %v128_v15 = vld [vmem:[#allocation5 + $0x50] sm:$0xff]  ;;  %s553_s7 = scalar_lea.vmem %s314_s6, 128  ;;  %p558_p3 = scmp.lt.s32.totalorder %s314_s6, %s314_s6 }
  0x2a   :  { %449 = vmatpush3.bf16.msra.mxu0 %v448_v5  ;;  %v457_v13 = vpack.c.bf16 %v126_v10, %v125_v9  ;;  %v38_v16 = vld [vmem:[#allocation2] sm:$0xff]  ;;  %v460_v17 = vpack.c.bf16 %v128_v15, %v127_v14  ;;  %v130_v19 = vld [vmem:[#allocation5 + $0x60] sm:$0xff]  ;;  %v131_v21 = vld [vmem:[#allocation5 + $0x68] sm:$0xff]  ;;  %p554_p2 = scmp.ne.s32.totalorder %s314_s6, %s553_s7  ;;  %p559_p4 = scmp.lt.s32.totalorder %s553_s7, %s553_s7 }
  0x2b   :  { %450 = vmatprep.subr.bf16.mxu0 %v585_v0  ;;  %455 = vmatpush3.bf16.msra.mxu1 %v454_v12  ;;  %v129_v18 = vld [vmem:[#allocation5 + $0x58] sm:$0xff]  ;;  %v132_v22 = vld [vmem:[#allocation5 + $0x70] sm:$0xff]  ;;  %v134_v25 = vld [vmem:[#allocation5 + $0x80] sm:$0xff] }
  0x2c   :  { %456 = vmatprep.subr.bf16.mxu1 %v585_v0  ;;  %v463_v20 = vpack.c.bf16 %v130_v19, %v129_v18  ;;  %v466_v23 = vpack.c.bf16 %v132_v22, %v131_v21  ;;  %v133_v24 = vld [vmem:[#allocation5 + $0x78] sm:$0xff]  ;;  %v135_v27 = vld [vmem:[#allocation5 + $0x88] sm:$0xff]  ;;  %v136_v28 = vld [vmem:[#allocation5 + $0x90] sm:$0xff]  ;;  %p560_p5 = por %p559_p4, %p558_p3 }
  0x2d   :  { %v469_v26 = vpack.c.bf16 %v134_v25, %v133_v24  ;;  %v472_v29 = vpack.c.bf16 %v136_v28, %v135_v27  ;;  %v137_v30 = vld [vmem:[#allocation5 + $0x98] sm:$0xff]  ;;  %v138_v31 = vld [vmem:[#allocation5 + $0xa0] sm:$0xff]  ;;  %v215_v33 = vld [vmem:[#allocation5 + $0xb0] sm:$0xff] }
  0x2e   :  { %452 = vmatpush3.bf16.msra.mxu0 %v451_v11  ;;  %v475_v32 = vpack.c.bf16 %v138_v31, %v137_v30  ;;  %v216_v34 = vld [vmem:[#allocation5 + $0xb8] sm:$0xff]  ;;  %v217_v35 = vld [vmem:[#allocation5 + $0xc0] sm:$0xff]  ;;  %v218_v37 = vld [vmem:[#allocation5 + $0xc8] sm:$0xff]  ;;  %p561_p6 = pnand %p560_p5, %p554_p2 }
  0x2f   :  { %477 = vmatprep.subr.bf16.mxu0 %v585_v0  ;;  %458 = vmatpush3.bf16.msra.mxu1 %v457_v13  ;;  %v478_v36 = vpack.c.bf16 %v216_v34, %v215_v33  ;;  %v481_v38 = vpack.c.bf16 %v218_v37, %v217_v35  ;;  %v219_v39 = vld [vmem:[#allocation5 + $0xd0] sm:$0xff]  ;;  %v220_v40 = vld [vmem:[#allocation5 + $0xd8] sm:$0xff]  ;;  %v221_v42 = vld [vmem:[#allocation5 + $0xe0] sm:$0xff] }
  0x30   :  { %459 = vmatprep.subr.bf16.mxu1 %v585_v0  ;;  %v484_v41 = vpack.c.bf16 %v220_v40, %v219_v39  ;;  %v222_v43 = vld [vmem:[#allocation5 + $0xe8] sm:$0xff]  ;;  %v223_v45 = vld [vmem:[#allocation5 + $0xf0] sm:$0xff]  ;;  %v224_v46 = vld [vmem:[#allocation5 + $0xf8] sm:$0xff] }
  0x31   :  { %375 = vmatmul.mubr.msk.f32.vlgmr.msra.gmra.mrb[0].mxu0 %vm48_vm1, %v38_v16  ;;  %v487_v44 = vpack.c.bf16 %v222_v43, %v221_v42  ;;  %v490_v47 = vpack.c.bf16 %v224_v46, %v223_v45  ;;  %v225_v48 = vld [vmem:[#allocation5 + $0x100] sm:$0xff]  ;;  %v226_v49 = vld [vmem:[#allocation5 + $0x108] sm:$0xff]  ;;  %v227_v51 = vld [vmem:[#allocation5 + $0x110] sm:$0xff] }
  0x32   :  { %444 = vmatprep.mubr.msk.f32.mxu0 %vm586_vm0, %v587_v1  ;;  %479 = vmatpush3.bf16.msra.mxu0 %v478_v36  ;;  %v493_v50 = vpack.c.bf16 %v226_v49, %v225_v48  ;;  %v228_v52 = vld [vmem:[#allocation5 + $0x118] sm:$0xff]  ;;  %v323_v54 = vld [vmem:[#allocation5 + $0x20] ss:$0 sm:$0xff]  ;;  %v230_v60 = vld [vmem:[#allocation5 + $0x128] sm:$0xff] }
  0x33   :  { %461 = vmatpush3.bf16.msra.mxu1 %v460_v17  ;;  %480 = vmatprep.subr.bf16.mxu0 %v585_v0  ;;  %v496_v53 = vpack.c.bf16 %v228_v52, %v227_v51  ;;  %v229_v59 = vld [vmem:[#allocation5 + $0x120] sm:$0xff]  ;;  %v325_v62 = vld [vmem:[#allocation5 + $0xa8] ss:$0 sm:$0xff]  ;;  %v326_v4 = vld [vmem:[#allocation5 + $0x130] ss:$0 sm:$0xff] }
  0x34   :  { %462 = vmatprep.subr.bf16.mxu1 %v585_v0  ;;  %v499_v61 = vpack.c.bf16 %v230_v60, %v229_v59 }
  0x36   :  { %482 = vmatpush3.bf16.msra.mxu0 %v481_v38 }
  0x37   :  { %464 = vmatpush3.bf16.msra.mxu1 %v463_v20  ;;  %483 = vmatprep.subr.bf16.mxu0 %v585_v0 }
  0x38   :  { %465 = vmatprep.subr.bf16.mxu1 %v585_v0 }
  0x3a   :  { %485 = vmatpush3.bf16.msra.mxu0 %v484_v41 }
  0x3b   :  { %467 = vmatpush3.bf16.msra.mxu1 %v466_v23  ;;  %486 = vmatprep.subr.bf16.mxu0 %v585_v0 }
  0x3c   :  { %468 = vmatprep.subr.bf16.mxu1 %v585_v0 }
  0x3e   :  { %488 = vmatpush3.bf16.msra.mxu0 %v487_v44 }
  0x3f   :  { %470 = vmatpush3.bf16.msra.mxu1 %v469_v26  ;;  %489 = vmatprep.subr.bf16.mxu0 %v585_v0 }
  0x40   :  { %471 = vmatprep.subr.bf16.mxu1 %v585_v0 }
  0x42   :  { %491 = vmatpush3.bf16.msra.mxu0 %v490_v47 }
  0x43   :  { %473 = vmatpush3.bf16.msra.mxu1 %v472_v29  ;;  %492 = vmatprep.subr.bf16.mxu0 %v585_v0 }
  0x44   :  { %474 = vmatprep.subr.bf16.mxu1 %v585_v0 }
  0x46   :  { %494 = vmatpush3.bf16.msra.mxu0 %v493_v50 }
  0x47   :  { %476 = vmatpush3.bf16.msra.mxu1 %v475_v32  ;;  %495 = vmatprep.subr.bf16.mxu0 %v585_v0 }
  0x4a   :  { %497 = vmatpush3.bf16.msra.mxu0 %v496_v53 }
  0x4b   :  { %498 = vmatprep.subr.bf16.mxu0 %v585_v0 }
  0x4e   :  { %500 = vmatpush3.bf16.msra.mxu0 %v499_v61 }
 0x104   :  { %v118_v55 = vpop.f32.mrb[0].mxu0 }
 0x105   :  { %v119_v56 = vadd.f32 %v323_v54, %v118_v55  ;;  %v376_v57 = vpop.f32.mrb[1].mxu0 }
 0x107   :  { %v122_v58 = vmax.f32 %v119_v56, 0.0 }
 0x109   :  { %410 = vmatmul.mubr.f32.vlgmr.msra.gmra.mrb[0].mxu1 %v122_v58 }
 0x1dc   :  { %v210_v63 = vpop.f32.mrb[0].mxu1 }
 0x1dd   :  { %v211_v1 = vadd.f32 %v325_v62, %v210_v63  ;;  %v411_v2 = vpop.f32.mrb[1].mxu1 }
 0x1df   :  { %v214_v3 = vmax.f32 %v211_v1, 0.0 }
 0x1e1   :  { %445 = vmatmul.mubr.f32.vlgmr.msra.gmra.mrb[2].mxu0 %v214_v3 }
 0x2b4   :  { %v302_v0 = vpop.f32.mrb[2].mxu0 }
 0x2b5   :  { %v303_v5 = vadd.f32 %v326_v4, %v302_v0  ;;  %v446_v6 = vpop.f32.mrb[3].mxu0 }
 0x2b7   :  { %306 = vst [vmem:[#allocation7] sm:$0xff] %v303_v5 }
 0x2b8   :  { %564 = shalt.err (!%p561_p6)
}
 0x2b9   :  { %s565_s10 = scalar_lea.hbm %s670_s2, 128 }
 0x2ba   :  { %p566_p7 = scmp.ne.s32.totalorder %s670_s2, %s565_s10  ;;  %p569_p8 = scmp.lt.u32.totalorder %s565_s10, %s670_s2 }
 0x2bc   :  { %p571_p9 = pnand %p569_p8, %p566_p7 }
 0x2be   :  { %574 = shalt.err (!%p571_p9)
}
 0x2bf   :  { %316 = dma.vmem_to_hbm [thread:$0]  %s314_s6, 128, %s670_s2, [#allocation4]  }
 0x2c0   :  { %579 = dma.done.wait [#allocation4], 128  }
 0x2c1   :  { %580 = vsyncadd [#allocation4], 4294967168 }
 0x2c2   :  { %320 = vsyncpa [#allocation3], 1 }
 0x2c3   :  { %321 = vsyncpa [#allocation6], 1 }
 0x2c4   :  { %322 = vsyncpa [#allocation4], 1 }

</bundles_post_ra>
